<compile_context>
chip_gen: v6e
topology: v6e:2x2x1
jax: 0.10.0
libtpu: 0.0.40
codegen_flags: <defaults>
</compile_context>

<pallas_src>
import functools

import jax
import jax.numpy as jnp
from jax import lax
from jax.experimental import pallas as pl
from jax.experimental.pallas import tpu as pltpu


def _uniform_from_hash(seed, base_elem, shape):
    """Counter-based uniform [0,1) randoms using only int32 VPU ops.

    Works on TPU (Mosaic) and in interpret mode (no TPU-only PRNG primitives).
    Hash: x ^= x>>16; x *= 0x45d9f3b; x ^= x>>16; x *= 0x45d9f3b; x ^= x>>16.
    """
    rows, cols = shape
    ri = lax.broadcasted_iota(jnp.int32, shape, 0)
    ci = lax.broadcasted_iota(jnp.int32, shape, 1)
    x = (base_elem + ri * jnp.int32(cols) + ci) + seed * jnp.int32(0x27D4EB2F)
    mult = jnp.int32(0x45D9F3B)
    x = x ^ lax.shift_right_logical(x, 16)
    x = x * mult
    x = x ^ lax.shift_right_logical(x, 16)
    x = x * mult
    x = x ^ lax.shift_right_logical(x, 16)
    # low 24 bits -> uniform in [0, 1)   (mask clears the sign bit, so exact)
    return (x & jnp.int32(0x00FFFFFF)).astype(jnp.float32) * jnp.float32(
        1.0 / float(1 << 24))


def _embedding_kernel(ids_ref, seed_ref, table_ref, out_ref, buf, sems, *,
                      chunk, emb_dim, drop_prob, apply_dropout):
    """Gather `chunk` embedding rows (HBM -> VMEM) + optional fused dropout.

    ids_ref  : (N_pad,) int32   token ids (SMEM, scalar-prefetched)
    seed_ref : (1,)     int32   dropout PRNG seed (SMEM, scalar-prefetched)
    table_ref: (V, E)           embedding table, left in HBM (pl.ANY)
    out_ref  : (chunk, E)       output block (VMEM)
    buf      : (chunk, E)       VMEM landing buffer for the row DMAs
    sems     : (chunk,)         DMA completion semaphores
    """
    c = pl.program_id(0)
    base = c * chunk

    # 1) issue one row-gather DMA per token of this chunk (latencies overlap)
    for j in range(chunk):
        row = ids_ref[base + j]
        pltpu.make_async_copy(table_ref.at[pl.ds(row, 1), :],
                              buf.at[pl.ds(j, 1), :],
                              sems.at[j]).start()
    # 2) wait for all of them
    for j in range(chunk):
        pltpu.make_async_copy(table_ref.at[pl.ds(0, 1), :],
                              buf.at[pl.ds(j, 1), :],
                              sems.at[j]).wait()

    vals = buf[...]

    if apply_dropout:
        # Train-mode inverted dropout fused in-kernel (counter-based hash PRNG
        # keyed on the global element index -> tiling-invariant randoms).
        u = _uniform_from_hash(seed_ref[0], base * jnp.int32(emb_dim),
                               (chunk, emb_dim))
        keep = u >= jnp.float32(drop_prob)
        scale = jnp.float32(1.0 / (1.0 - drop_prob))
        vals = jnp.where(keep, vals * scale, jnp.float32(0.0))

    out_ref[...] = vals.astype(out_ref.dtype)


def embedding_forward(ids, table, *, drop_prob=0.0, training=False,
                      seed=0, chunk=8):
    """ids: any-rank int array; table: (V, E).  Returns ids.shape + (E,)."""
    V, E = table.shape
    orig_shape = ids.shape
    flat = ids.reshape(-1).astype(jnp.int32)
    n = flat.shape[0]

    chunk = max(8, int(chunk))                 # keep the (8,128) block rule
    n_pad = pl.cdiv(n, chunk) * chunk
    if n_pad != n:
        flat = jnp.pad(flat, (0, n_pad - n))   # pad ids with 0 (any valid row)

    seed_arr = jnp.asarray([seed], jnp.int32)
    apply_dropout = bool(training) and float(drop_prob) > 0.0

    out = pl.pallas_call(
        functools.partial(_embedding_kernel, chunk=chunk, emb_dim=E,
                          drop_prob=float(drop_prob),
                          apply_dropout=apply_dropout),
        out_shape=jax.ShapeDtypeStruct((n_pad, E), table.dtype),
        grid_spec=pltpu.PrefetchScalarGridSpec(
            num_scalar_prefetch=2,             # ids + seed -> SMEM
            grid=(n_pad // chunk,),
            in_specs=[pl.BlockSpec(memory_space=pl.ANY)],   # table stays in HBM
            out_specs=pl.BlockSpec((chunk, E), lambda c, ids, seed: (c, 0)),
            scratch_shapes=[
                pltpu.VMEM((chunk, E), table.dtype),
                pltpu.SemaphoreType.DMA((chunk,)),
            ],
        ),
        compiler_params=pltpu.CompilerParams(
            dimension_semantics=("parallel",)),  # chunks are independent
    )(flat, seed_arr, table)

    return out[:n].reshape(*orig_shape, E)


if __name__ == "__main__":
    key = jax.random.PRNGKey(0)
    k_tab, k_ids = jax.random.split(key)

    V, E = 256, 128          # vocab size, embedding_dim (lane-dense)
    B, T = 2, 8              # batch, sequence length
    PAD = 0                  # pad_idx

    table = jax.random.normal(k_tab, (V, E), jnp.float32)
    table = table.at[PAD].set(0.0)             # conventional zero pad row
    ids = jax.random.randint(k_ids, (B, T), 1, V).astype(jnp.int32)
    ids = ids.at[1, 6:].set(PAD)               # some padded positions

    ref = jnp.take(table, ids, axis=0)

    # eval-mode forward (nn.Dropout is identity in eval)
    out = embedding_forward(ids, table, drop_prob=0.1, training=False)
    out = jax.block_until_ready(out)
    assert out.shape == (B, T, E), out.shape
    assert bool(jnp.all(jnp.isfinite(out)))
    assert bool(jnp.allclose(out, ref, rtol=1e-6, atol=1e-6))
    assert float(jnp.max(jnp.abs(out[1, 6:, :]))) == 0.0   # pad rows are zero

    # train-mode forward: every element is either dropped (0) or scaled 1/(1-p)
    p = 0.5
    out_tr = embedding_forward(ids, table, drop_prob=p, training=True, seed=123)
    out_tr = jax.block_until_ready(out_tr)
    ok = jnp.isclose(out_tr, 0.0) | jnp.isclose(out_tr, ref / (1.0 - p),
                                                rtol=1e-5, atol=1e-5)
    assert bool(jnp.all(ok))

    print("KERNEL_OK")
</pallas_src>

<mosaic_0001>
module attributes {stable_mosaic.version = 11 : i64} {
  func.func @_embedding_kernel(%arg0: i32, %arg1: memref<16xi32, #tpu.memory_space<smem>>, %arg2: memref<1xi32, #tpu.memory_space<smem>>, %arg3: memref<256x128xf32, #tpu.memory_space<any>>, %arg4: memref<8x128xf32, #tpu.memory_space<vmem>>, %arg5: memref<8x128xf32, #tpu.memory_space<vmem>>, %arg6: memref<8x!tpu.dma_semaphore, #tpu.memory_space<semaphore_mem>>) attributes {dimension_semantics = [#tpu.dimension_semantics<parallel>], iteration_bounds = array<i64: 2>, scalar_prefetch = 2 : i64, scratch_operands = 2 : i64, tpu.core_type = #tpu.core_type<tc>, window_params = [{}, {transform_indices = @transform_1, window_bounds = array<i64: 8, 128>}]} {
    %c8_i32 = arith.constant 8 : i32
    %0 = arith.muli %arg0, %c8_i32 : i32
    %c0_i32 = arith.constant 0 : i32
    %1 = arith.addi %0, %c0_i32 : i32
    %2 = arith.index_cast %1 : i32 to index
    %3 = memref.load %arg1[%2] : memref<16xi32, #tpu.memory_space<smem>>
    %c0_i32_0 = arith.constant 0 : i32
    %c0_i32_1 = arith.constant 0 : i32
    %4 = tpu.memref_slice %arg3[%3, %c0_i32_1] : memref<256x128xf32, #tpu.memory_space<any>> -> memref<1x128xf32, #tpu.memory_space<any>>
    %c0_i32_2 = arith.constant 0 : i32
    %c0_i32_3 = arith.constant 0 : i32
    %5 = tpu.memref_slice %arg5[%c0_i32_2, %c0_i32_3] : memref<8x128xf32, #tpu.memory_space<vmem>> -> memref<1x128xf32, #tpu.memory_space<vmem>>
    %6 = tpu.memref_slice %arg6[%c0_i32_0] : memref<8x!tpu.dma_semaphore, #tpu.memory_space<semaphore_mem>> -> memref<1x!tpu.dma_semaphore, #tpu.memory_space<semaphore_mem>>
    %7 = tpu.memref_squeeze %6 : memref<1x!tpu.dma_semaphore, #tpu.memory_space<semaphore_mem>> -> memref<!tpu.dma_semaphore, #tpu.memory_space<semaphore_mem>>
    tpu.enqueue_dma source(%4 : memref<1x128xf32, #tpu.memory_space<any>>) target(%5 : memref<1x128xf32, #tpu.memory_space<vmem>>) target_semaphore(%7 : memref<!tpu.dma_semaphore, #tpu.memory_space<semaphore_mem>>)
    %c1_i32 = arith.constant 1 : i32
    %8 = arith.addi %0, %c1_i32 : i32
    %9 = arith.index_cast %8 : i32 to index
    %10 = memref.load %arg1[%9] : memref<16xi32, #tpu.memory_space<smem>>
    %c1_i32_4 = arith.constant 1 : i32
    %c0_i32_5 = arith.constant 0 : i32
    %11 = tpu.memref_slice %arg3[%10, %c0_i32_5] : memref<256x128xf32, #tpu.memory_space<any>> -> memref<1x128xf32, #tpu.memory_space<any>>
    %c1_i32_6 = arith.constant 1 : i32
    %c0_i32_7 = arith.constant 0 : i32
    %12 = tpu.memref_slice %arg5[%c1_i32_6, %c0_i32_7] : memref<8x128xf32, #tpu.memory_space<vmem>> -> memref<1x128xf32, #tpu.memory_space<vmem>>
    %13 = tpu.memref_slice %arg6[%c1_i32_4] : memref<8x!tpu.dma_semaphore, #tpu.memory_space<semaphore_mem>> -> memref<1x!tpu.dma_semaphore, #tpu.memory_space<semaphore_mem>>
    %14 = tpu.memref_squeeze %13 : memref<1x!tpu.dma_semaphore, #tpu.memory_space<semaphore_mem>> -> memref<!tpu.dma_semaphore, #tpu.memory_space<semaphore_mem>>
    tpu.enqueue_dma source(%11 : memref<1x128xf32, #tpu.memory_space<any>>) target(%12 : memref<1x128xf32, #tpu.memory_space<vmem>>) target_semaphore(%14 : memref<!tpu.dma_semaphore, #tpu.memory_space<semaphore_mem>>)
    %c2_i32 = arith.constant 2 : i32
    %15 = arith.addi %0, %c2_i32 : i32
    %16 = arith.index_cast %15 : i32 to index
    %17 = memref.load %arg1[%16] : memref<16xi32, #tpu.memory_space<smem>>
    %c2_i32_8 = arith.constant 2 : i32
    %c0_i32_9 = arith.constant 0 : i32
    %18 = tpu.memref_slice %arg3[%17, %c0_i32_9] : memref<256x128xf32, #tpu.memory_space<any>> -> memref<1x128xf32, #tpu.memory_space<any>>
    %c2_i32_10 = arith.constant 2 : i32
    %c0_i32_11 = arith.constant 0 : i32
    %19 = tpu.memref_slice %arg5[%c2_i32_10, %c0_i32_11] : memref<8x128xf32, #tpu.memory_space<vmem>> -> memref<1x128xf32, #tpu.memory_space<vmem>>
    %20 = tpu.memref_slice %arg6[%c2_i32_8] : memref<8x!tpu.dma_semaphore, #tpu.memory_space<semaphore_mem>> -> memref<1x!tpu.dma_semaphore, #tpu.memory_space<semaphore_mem>>
    %21 = tpu.memref_squeeze %20 : memref<1x!tpu.dma_semaphore, #tpu.memory_space<semaphore_mem>> -> memref<!tpu.dma_semaphore, #tpu.memory_space<semaphore_mem>>
    tpu.enqueue_dma source(%18 : memref<1x128xf32, #tpu.memory_space<any>>) target(%19 : memref<1x128xf32, #tpu.memory_space<vmem>>) target_semaphore(%21 : memref<!tpu.dma_semaphore, #tpu.memory_space<semaphore_mem>>)
    %c3_i32 = arith.constant 3 : i32
    %22 = arith.addi %0, %c3_i32 : i32
    %23 = arith.index_cast %22 : i32 to index
    %24 = memref.load %arg1[%23] : memref<16xi32, #tpu.memory_space<smem>>
    %c3_i32_12 = arith.constant 3 : i32
    %c0_i32_13 = arith.constant 0 : i32
    %25 = tpu.memref_slice %arg3[%24, %c0_i32_13] : memref<256x128xf32, #tpu.memory_space<any>> -> memref<1x128xf32, #tpu.memory_space<any>>
    %c3_i32_14 = arith.constant 3 : i32
    %c0_i32_15 = arith.constant 0 : i32
    %26 = tpu.memref_slice %arg5[%c3_i32_14, %c0_i32_15] : memref<8x128xf32, #tpu.memory_space<vmem>> -> memref<1x128xf32, #tpu.memory_space<vmem>>
    %27 = tpu.memref_slice %arg6[%c3_i32_12] : memref<8x!tpu.dma_semaphore, #tpu.memory_space<semaphore_mem>> -> memref<1x!tpu.dma_semaphore, #tpu.memory_space<semaphore_mem>>
    %28 = tpu.memref_squeeze %27 : memref<1x!tpu.dma_semaphore, #tpu.memory_space<semaphore_mem>> -> memref<!tpu.dma_semaphore, #tpu.memory_space<semaphore_mem>>
    tpu.enqueue_dma source(%25 : memref<1x128xf32, #tpu.memory_space<any>>) target(%26 : memref<1x128xf32, #tpu.memory_space<vmem>>) target_semaphore(%28 : memref<!tpu.dma_semaphore, #tpu.memory_space<semaphore_mem>>)
    %c4_i32 = arith.constant 4 : i32
    %29 = arith.addi %0, %c4_i32 : i32
    %30 = arith.index_cast %29 : i32 to index
    %31 = memref.load %arg1[%30] : memref<16xi32, #tpu.memory_space<smem>>
    %c4_i32_16 = arith.constant 4 : i32
    %c0_i32_17 = arith.constant 0 : i32
    %32 = tpu.memref_slice %arg3[%31, %c0_i32_17] : memref<256x128xf32, #tpu.memory_space<any>> -> memref<1x128xf32, #tpu.memory_space<any>>
    %c4_i32_18 = arith.constant 4 : i32
    %c0_i32_19 = arith.constant 0 : i32
    %33 = tpu.memref_slice %arg5[%c4_i32_18, %c0_i32_19] : memref<8x128xf32, #tpu.memory_space<vmem>> -> memref<1x128xf32, #tpu.memory_space<vmem>>
    %34 = tpu.memref_slice %arg6[%c4_i32_16] : memref<8x!tpu.dma_semaphore, #tpu.memory_space<semaphore_mem>> -> memref<1x!tpu.dma_semaphore, #tpu.memory_space<semaphore_mem>>
    %35 = tpu.memref_squeeze %34 : memref<1x!tpu.dma_semaphore, #tpu.memory_space<semaphore_mem>> -> memref<!tpu.dma_semaphore, #tpu.memory_space<semaphore_mem>>
    tpu.enqueue_dma source(%32 : memref<1x128xf32, #tpu.memory_space<any>>) target(%33 : memref<1x128xf32, #tpu.memory_space<vmem>>) target_semaphore(%35 : memref<!tpu.dma_semaphore, #tpu.memory_space<semaphore_mem>>)
    %c5_i32 = arith.constant 5 : i32
    %36 = arith.addi %0, %c5_i32 : i32
    %37 = arith.index_cast %36 : i32 to index
    %38 = memref.load %arg1[%37] : memref<16xi32, #tpu.memory_space<smem>>
    %c5_i32_20 = arith.constant 5 : i32
    %c0_i32_21 = arith.constant 0 : i32
    %39 = tpu.memref_slice %arg3[%38, %c0_i32_21] : memref<256x128xf32, #tpu.memory_space<any>> -> memref<1x128xf32, #tpu.memory_space<any>>
    %c5_i32_22 = arith.constant 5 : i32
    %c0_i32_23 = arith.constant 0 : i32
    %40 = tpu.memref_slice %arg5[%c5_i32_22, %c0_i32_23] : memref<8x128xf32, #tpu.memory_space<vmem>> -> memref<1x128xf32, #tpu.memory_space<vmem>>
    %41 = tpu.memref_slice %arg6[%c5_i32_20] : memref<8x!tpu.dma_semaphore, #tpu.memory_space<semaphore_mem>> -> memref<1x!tpu.dma_semaphore, #tpu.memory_space<semaphore_mem>>
    %42 = tpu.memref_squeeze %41 : memref<1x!tpu.dma_semaphore, #tpu.memory_space<semaphore_mem>> -> memref<!tpu.dma_semaphore, #tpu.memory_space<semaphore_mem>>
    tpu.enqueue_dma source(%39 : memref<1x128xf32, #tpu.memory_space<any>>) target(%40 : memref<1x128xf32, #tpu.memory_space<vmem>>) target_semaphore(%42 : memref<!tpu.dma_semaphore, #tpu.memory_space<semaphore_mem>>)
    %c6_i32 = arith.constant 6 : i32
    %43 = arith.addi %0, %c6_i32 : i32
    %44 = arith.index_cast %43 : i32 to index
    %45 = memref.load %arg1[%44] : memref<16xi32, #tpu.memory_space<smem>>
    %c6_i32_24 = arith.constant 6 : i32
    %c0_i32_25 = arith.constant 0 : i32
    %46 = tpu.memref_slice %arg3[%45, %c0_i32_25] : memref<256x128xf32, #tpu.memory_space<any>> -> memref<1x128xf32, #tpu.memory_space<any>>
    %c6_i32_26 = arith.constant 6 : i32
    %c0_i32_27 = arith.constant 0 : i32
    %47 = tpu.memref_slice %arg5[%c6_i32_26, %c0_i32_27] : memref<8x128xf32, #tpu.memory_space<vmem>> -> memref<1x128xf32, #tpu.memory_space<vmem>>
    %48 = tpu.memref_slice %arg6[%c6_i32_24] : memref<8x!tpu.dma_semaphore, #tpu.memory_space<semaphore_mem>> -> memref<1x!tpu.dma_semaphore, #tpu.memory_space<semaphore_mem>>
    %49 = tpu.memref_squeeze %48 : memref<1x!tpu.dma_semaphore, #tpu.memory_space<semaphore_mem>> -> memref<!tpu.dma_semaphore, #tpu.memory_space<semaphore_mem>>
    tpu.enqueue_dma source(%46 : memref<1x128xf32, #tpu.memory_space<any>>) target(%47 : memref<1x128xf32, #tpu.memory_space<vmem>>) target_semaphore(%49 : memref<!tpu.dma_semaphore, #tpu.memory_space<semaphore_mem>>)
    %c7_i32 = arith.constant 7 : i32
    %50 = arith.addi %0, %c7_i32 : i32
    %51 = arith.index_cast %50 : i32 to index
    %52 = memref.load %arg1[%51] : memref<16xi32, #tpu.memory_space<smem>>
    %c7_i32_28 = arith.constant 7 : i32
    %c0_i32_29 = arith.constant 0 : i32
    %53 = tpu.memref_slice %arg3[%52, %c0_i32_29] : memref<256x128xf32, #tpu.memory_space<any>> -> memref<1x128xf32, #tpu.memory_space<any>>
    %c7_i32_30 = arith.constant 7 : i32
    %c0_i32_31 = arith.constant 0 : i32
    %54 = tpu.memref_slice %arg5[%c7_i32_30, %c0_i32_31] : memref<8x128xf32, #tpu.memory_space<vmem>> -> memref<1x128xf32, #tpu.memory_space<vmem>>
    %55 = tpu.memref_slice %arg6[%c7_i32_28] : memref<8x!tpu.dma_semaphore, #tpu.memory_space<semaphore_mem>> -> memref<1x!tpu.dma_semaphore, #tpu.memory_space<semaphore_mem>>
    %56 = tpu.memref_squeeze %55 : memref<1x!tpu.dma_semaphore, #tpu.memory_space<semaphore_mem>> -> memref<!tpu.dma_semaphore, #tpu.memory_space<semaphore_mem>>
    tpu.enqueue_dma source(%53 : memref<1x128xf32, #tpu.memory_space<any>>) target(%54 : memref<1x128xf32, #tpu.memory_space<vmem>>) target_semaphore(%56 : memref<!tpu.dma_semaphore, #tpu.memory_space<semaphore_mem>>)
    %c0_i32_32 = arith.constant 0 : i32
    %c0_i32_33 = arith.constant 0 : i32
    %c0_i32_34 = arith.constant 0 : i32
    %57 = tpu.memref_slice %arg3[%c0_i32_33, %c0_i32_34] : memref<256x128xf32, #tpu.memory_space<any>> -> memref<1x128xf32, #tpu.memory_space<any>>
    %c0_i32_35 = arith.constant 0 : i32
    %c0_i32_36 = arith.constant 0 : i32
    %58 = tpu.memref_slice %arg5[%c0_i32_35, %c0_i32_36] : memref<8x128xf32, #tpu.memory_space<vmem>> -> memref<1x128xf32, #tpu.memory_space<vmem>>
    %59 = tpu.memref_slice %arg6[%c0_i32_32] : memref<8x!tpu.dma_semaphore, #tpu.memory_space<semaphore_mem>> -> memref<1x!tpu.dma_semaphore, #tpu.memory_space<semaphore_mem>>
    %60 = tpu.memref_squeeze %59 : memref<1x!tpu.dma_semaphore, #tpu.memory_space<semaphore_mem>> -> memref<!tpu.dma_semaphore, #tpu.memory_space<semaphore_mem>>
    tpu.wait_dma2 semaphore(%60 : memref<!tpu.dma_semaphore, #tpu.memory_space<semaphore_mem>>) src(%57 : memref<1x128xf32, #tpu.memory_space<any>>) dst(%58 : memref<1x128xf32, #tpu.memory_space<vmem>>)
    %c1_i32_37 = arith.constant 1 : i32
    %c0_i32_38 = arith.constant 0 : i32
    %c0_i32_39 = arith.constant 0 : i32
    %61 = tpu.memref_slice %arg3[%c0_i32_38, %c0_i32_39] : memref<256x128xf32, #tpu.memory_space<any>> -> memref<1x128xf32, #tpu.memory_space<any>>
    %c1_i32_40 = arith.constant 1 : i32
    %c0_i32_41 = arith.constant 0 : i32
    %62 = tpu.memref_slice %arg5[%c1_i32_40, %c0_i32_41] : memref<8x128xf32, #tpu.memory_space<vmem>> -> memref<1x128xf32, #tpu.memory_space<vmem>>
    %63 = tpu.memref_slice %arg6[%c1_i32_37] : memref<8x!tpu.dma_semaphore, #tpu.memory_space<semaphore_mem>> -> memref<1x!tpu.dma_semaphore, #tpu.memory_space<semaphore_mem>>
    %64 = tpu.memref_squeeze %63 : memref<1x!tpu.dma_semaphore, #tpu.memory_space<semaphore_mem>> -> memref<!tpu.dma_semaphore, #tpu.memory_space<semaphore_mem>>
    tpu.wait_dma2 semaphore(%64 : memref<!tpu.dma_semaphore, #tpu.memory_space<semaphore_mem>>) src(%61 : memref<1x128xf32, #tpu.memory_space<any>>) dst(%62 : memref<1x128xf32, #tpu.memory_space<vmem>>)
    %c2_i32_42 = arith.constant 2 : i32
    %c0_i32_43 = arith.constant 0 : i32
    %c0_i32_44 = arith.constant 0 : i32
    %65 = tpu.memref_slice %arg3[%c0_i32_43, %c0_i32_44] : memref<256x128xf32, #tpu.memory_space<any>> -> memref<1x128xf32, #tpu.memory_space<any>>
    %c2_i32_45 = arith.constant 2 : i32
    %c0_i32_46 = arith.constant 0 : i32
    %66 = tpu.memref_slice %arg5[%c2_i32_45, %c0_i32_46] : memref<8x128xf32, #tpu.memory_space<vmem>> -> memref<1x128xf32, #tpu.memory_space<vmem>>
    %67 = tpu.memref_slice %arg6[%c2_i32_42] : memref<8x!tpu.dma_semaphore, #tpu.memory_space<semaphore_mem>> -> memref<1x!tpu.dma_semaphore, #tpu.memory_space<semaphore_mem>>
    %68 = tpu.memref_squeeze %67 : memref<1x!tpu.dma_semaphore, #tpu.memory_space<semaphore_mem>> -> memref<!tpu.dma_semaphore, #tpu.memory_space<semaphore_mem>>
    tpu.wait_dma2 semaphore(%68 : memref<!tpu.dma_semaphore, #tpu.memory_space<semaphore_mem>>) src(%65 : memref<1x128xf32, #tpu.memory_space<any>>) dst(%66 : memref<1x128xf32, #tpu.memory_space<vmem>>)
    %c3_i32_47 = arith.constant 3 : i32
    %c0_i32_48 = arith.constant 0 : i32
    %c0_i32_49 = arith.constant 0 : i32
    %69 = tpu.memref_slice %arg3[%c0_i32_48, %c0_i32_49] : memref<256x128xf32, #tpu.memory_space<any>> -> memref<1x128xf32, #tpu.memory_space<any>>
    %c3_i32_50 = arith.constant 3 : i32
    %c0_i32_51 = arith.constant 0 : i32
    %70 = tpu.memref_slice %arg5[%c3_i32_50, %c0_i32_51] : memref<8x128xf32, #tpu.memory_space<vmem>> -> memref<1x128xf32, #tpu.memory_space<vmem>>
    %71 = tpu.memref_slice %arg6[%c3_i32_47] : memref<8x!tpu.dma_semaphore, #tpu.memory_space<semaphore_mem>> -> memref<1x!tpu.dma_semaphore, #tpu.memory_space<semaphore_mem>>
    %72 = tpu.memref_squeeze %71 : memref<1x!tpu.dma_semaphore, #tpu.memory_space<semaphore_mem>> -> memref<!tpu.dma_semaphore, #tpu.memory_space<semaphore_mem>>
    tpu.wait_dma2 semaphore(%72 : memref<!tpu.dma_semaphore, #tpu.memory_space<semaphore_mem>>) src(%69 : memref<1x128xf32, #tpu.memory_space<any>>) dst(%70 : memref<1x128xf32, #tpu.memory_space<vmem>>)
    %c4_i32_52 = arith.constant 4 : i32
    %c0_i32_53 = arith.constant 0 : i32
    %c0_i32_54 = arith.constant 0 : i32
    %73 = tpu.memref_slice %arg3[%c0_i32_53, %c0_i32_54] : memref<256x128xf32, #tpu.memory_space<any>> -> memref<1x128xf32, #tpu.memory_space<any>>
    %c4_i32_55 = arith.constant 4 : i32
    %c0_i32_56 = arith.constant 0 : i32
    %74 = tpu.memref_slice %arg5[%c4_i32_55, %c0_i32_56] : memref<8x128xf32, #tpu.memory_space<vmem>> -> memref<1x128xf32, #tpu.memory_space<vmem>>
    %75 = tpu.memref_slice %arg6[%c4_i32_52] : memref<8x!tpu.dma_semaphore, #tpu.memory_space<semaphore_mem>> -> memref<1x!tpu.dma_semaphore, #tpu.memory_space<semaphore_mem>>
    %76 = tpu.memref_squeeze %75 : memref<1x!tpu.dma_semaphore, #tpu.memory_space<semaphore_mem>> -> memref<!tpu.dma_semaphore, #tpu.memory_space<semaphore_mem>>
    tpu.wait_dma2 semaphore(%76 : memref<!tpu.dma_semaphore, #tpu.memory_space<semaphore_mem>>) src(%73 : memref<1x128xf32, #tpu.memory_space<any>>) dst(%74 : memref<1x128xf32, #tpu.memory_space<vmem>>)
    %c5_i32_57 = arith.constant 5 : i32
    %c0_i32_58 = arith.constant 0 : i32
    %c0_i32_59 = arith.constant 0 : i32
    %77 = tpu.memref_slice %arg3[%c0_i32_58, %c0_i32_59] : memref<256x128xf32, #tpu.memory_space<any>> -> memref<1x128xf32, #tpu.memory_space<any>>
    %c5_i32_60 = arith.constant 5 : i32
    %c0_i32_61 = arith.constant 0 : i32
    %78 = tpu.memref_slice %arg5[%c5_i32_60, %c0_i32_61] : memref<8x128xf32, #tpu.memory_space<vmem>> -> memref<1x128xf32, #tpu.memory_space<vmem>>
    %79 = tpu.memref_slice %arg6[%c5_i32_57] : memref<8x!tpu.dma_semaphore, #tpu.memory_space<semaphore_mem>> -> memref<1x!tpu.dma_semaphore, #tpu.memory_space<semaphore_mem>>
    %80 = tpu.memref_squeeze %79 : memref<1x!tpu.dma_semaphore, #tpu.memory_space<semaphore_mem>> -> memref<!tpu.dma_semaphore, #tpu.memory_space<semaphore_mem>>
    tpu.wait_dma2 semaphore(%80 : memref<!tpu.dma_semaphore, #tpu.memory_space<semaphore_mem>>) src(%77 : memref<1x128xf32, #tpu.memory_space<any>>) dst(%78 : memref<1x128xf32, #tpu.memory_space<vmem>>)
    %c6_i32_62 = arith.constant 6 : i32
    %c0_i32_63 = arith.constant 0 : i32
    %c0_i32_64 = arith.constant 0 : i32
    %81 = tpu.memref_slice %arg3[%c0_i32_63, %c0_i32_64] : memref<256x128xf32, #tpu.memory_space<any>> -> memref<1x128xf32, #tpu.memory_space<any>>
    %c6_i32_65 = arith.constant 6 : i32
    %c0_i32_66 = arith.constant 0 : i32
    %82 = tpu.memref_slice %arg5[%c6_i32_65, %c0_i32_66] : memref<8x128xf32, #tpu.memory_space<vmem>> -> memref<1x128xf32, #tpu.memory_space<vmem>>
    %83 = tpu.memref_slice %arg6[%c6_i32_62] : memref<8x!tpu.dma_semaphore, #tpu.memory_space<semaphore_mem>> -> memref<1x!tpu.dma_semaphore, #tpu.memory_space<semaphore_mem>>
    %84 = tpu.memref_squeeze %83 : memref<1x!tpu.dma_semaphore, #tpu.memory_space<semaphore_mem>> -> memref<!tpu.dma_semaphore, #tpu.memory_space<semaphore_mem>>
    tpu.wait_dma2 semaphore(%84 : memref<!tpu.dma_semaphore, #tpu.memory_space<semaphore_mem>>) src(%81 : memref<1x128xf32, #tpu.memory_space<any>>) dst(%82 : memref<1x128xf32, #tpu.memory_space<vmem>>)
    %c7_i32_67 = arith.constant 7 : i32
    %c0_i32_68 = arith.constant 0 : i32
    %c0_i32_69 = arith.constant 0 : i32
    %85 = tpu.memref_slice %arg3[%c0_i32_68, %c0_i32_69] : memref<256x128xf32, #tpu.memory_space<any>> -> memref<1x128xf32, #tpu.memory_space<any>>
    %c7_i32_70 = arith.constant 7 : i32
    %c0_i32_71 = arith.constant 0 : i32
    %86 = tpu.memref_slice %arg5[%c7_i32_70, %c0_i32_71] : memref<8x128xf32, #tpu.memory_space<vmem>> -> memref<1x128xf32, #tpu.memory_space<vmem>>
    %87 = tpu.memref_slice %arg6[%c7_i32_67] : memref<8x!tpu.dma_semaphore, #tpu.memory_space<semaphore_mem>> -> memref<1x!tpu.dma_semaphore, #tpu.memory_space<semaphore_mem>>
    %88 = tpu.memref_squeeze %87 : memref<1x!tpu.dma_semaphore, #tpu.memory_space<semaphore_mem>> -> memref<!tpu.dma_semaphore, #tpu.memory_space<semaphore_mem>>
    tpu.wait_dma2 semaphore(%88 : memref<!tpu.dma_semaphore, #tpu.memory_space<semaphore_mem>>) src(%85 : memref<1x128xf32, #tpu.memory_space<any>>) dst(%86 : memref<1x128xf32, #tpu.memory_space<vmem>>)
    %c0 = arith.constant 0 : index
    %c0_72 = arith.constant 0 : index
    %89 = vector.load %arg5[%c0, %c0_72] : memref<8x128xf32, #tpu.memory_space<vmem>>, vector<8x128xf32>
    %c0_73 = arith.constant 0 : index
    %c0_74 = arith.constant 0 : index
    %90 = vector.load %arg4[%c0_73, %c0_74] : memref<8x128xf32, #tpu.memory_space<vmem>>, vector<8x128xf32>
    tpu.vector_store %arg4[%c0_73, %c0_74], %89 {strides = array<i32>} : memref<8x128xf32, #tpu.memory_space<vmem>>, vector<8x128xf32>,
    return
  }
  func.func @transform_1(%arg0: i32, %arg1: memref<16xi32, #tpu.memory_space<smem>>, %arg2: memref<1xi32, #tpu.memory_space<smem>>) -> (i32, i32) {
    %c0_i32 = arith.constant 0 : i32
    %c0_i32_0 = arith.constant 0 : i32
    return %arg0, %c0_i32 : i32, i32
  }
}

</mosaic_0001>

<bundles_post_ra>
// kernel: tpu_custom_call.1
= control target key start
LH: loop header
LB: loop body
LE: loop exit
PB: predicated region body
PF: predicated region fallthrough
CT: control target
= control target key end

     0   :  { %s900_s0 = inlined_call_operand.vmem [shape: s32[16], index: 0, kind: input, shape index: {}]   ;;  %s901_s1 = inlined_call_operand.<no memory space> [shape: s32[1], index: 1, kind: input, shape index: {}]   ;;  %s902_s2 = inlined_call_operand.hbm [shape: f32[256,128], index: 2, kind: input, shape index: {}]   ;;  %s903_s3 = inlined_call_operand.hbm [shape: f32[16,128], index: 3, kind: output, shape index: {}]  }
   0x1   :  { %s8_s14 = sshll.u32 %s900_s0, 4  ;;  %s9_s14 = int_to_ptr.vmem [resolvable:$true] %s8_s14 }
   0x2   :  { %s402_s15 = scalar_lea.vmem %s9_s14, 16  ;;  %p407_p1 = scmp.lt.s32.totalorder %s9_s14, %s9_s14 }
   0x3   :  { %p403_p0 = scmp.ne.s32.totalorder %s9_s14, %s402_s15  ;;  %p408_p2 = scmp.lt.s32.totalorder %s402_s15, %s402_s15 }
   0x5   :  { %p409_p3 = por %p408_p2, %p407_p1 }
   0x7   :  { %p410_p4 = pnand %p409_p3, %p403_p0 }
   0x9   :  { %413 = shalt.err (!%p410_p4)  }
   0xa   :  { %s662_s16 = smov [#allocation5]  }
   0xb   :  { %11 = dma.vmem_to_smem %s9_s14, 16, %s662_s16, [#allocation4] }
   0xc   :  { %628 = dma.done.wait [#allocation4], 16 }
   0xd   :  { %629 = vsyncadd [#allocation4], 4294967280 }
   0xe   :  { %14 = sfence }
   0xf   :  { %15 = vsyncpa [#allocation8], 0 }
  0x10   :  { %17 = vsyncpa [#allocation8 + $0x1], 0  ;;  %s695_s1 = smov 0   ;;  %s697_s17 = smov 0  }
  0x11   :  { %s699_s0 = smov 0  }
  0x12 LB: > { %s337_s18 = sadd.s32 4294967295, %s660_s0   ;;  %s712_s19 = sadd.s32 1, %s660_s0   ;;  %s660_s0 = sphi %s699_s0, %s908_s0   ;;  %s656_s17 = sphi %s697_s17, %s907_s17   ;;  %s652_s1 = sphi %s695_s1, %s906_s1  }
  0x13   : > { %s26_s20 = ssub.s32 %s660_s0, %s712_s19  ;;  %s29_s21 = sadd.s32 1, %s656_s17 }
  0x14   : > { %p27_p5 = scmp.eq.s32.totalorder %s26_s20, 0  ;;  %p338_p6 = scmp.ne.s32.totalorder %s26_s20, 0 }
  0x15   : > { %p33_p7 = scmp.eq.s32.totalorder %s660_s0, 1  ;;  %p38_p8 = scmp.ne.s32.totalorder %s656_s17, %s652_s1 }
  0x16   : > { %s721_s22 = scalar_select %p27_p5, %s656_s17, %s29_s21  }
  0x17   : > { %p723_p9 = por %p338_p6, %p33_p7  ;;  %p39_p10 = scmp.eq.s32.totalorder %s337_s18, 1 }
  0x18   : > { %p339_p12 = scmp.ge.s32.totalorder %s660_s0, 2 }
  0x19   : > { %p727_p11 = por %p39_p10, %p38_p8  ;;  %s53_s25 = sand.u32 (!%p339_p12), 1, %s656_s17  }
  0x1a   : > { %48 = sbr.rel (%p339_p12) target bundleno = 230 (0xe6), region = 12  ;;  %s734_s26 = sshll.u32 (!%p339_p12), %s660_s0, 3 }
  0x1b   : > { %s738_s27 = sshll.u32 (!%p339_p12), %s53_s25, 3  ;;  %s57_s28 = sld [smem:[#allocation5 + %s734_s26]] (!%p339_p12) }
  0x1c   : > { %s663_s29 = smov (!%p339_p12), [#allocation2]   ;;  %s71_s4 = sadd.s32 (!%p339_p12), 1, %s734_s26 }
  0x1d   : > { %s67_s30 = sshll.u32 (!%p339_p12), %s663_s29, 4  ;;  %s744_s5 = sld [smem:[#allocation5 + %s71_s4]] (!%p339_p12)  ;;  %s742_s30 = int_to_ptr.vmem [resolvable:$true] %s67_s30 }
  0x1e   : > { %s88_s6 = sadd.s32 (!%p339_p12), 2, %s734_s26  ;;  %s664_s7 = smov (!%p339_p12), [#allocation2 + $0x1]  }
  0x1f   : > { %s84_s8 = sshll.u32 %s664_s7, 4  ;;  %s747_s9 = sld [smem:[#allocation5 + %s88_s6]]  ;;  %s749_s8 = int_to_ptr.vmem [resolvable:$true] %s84_s8 }
  0x20   : > { %s757_s18 = scalar_lea.hbm %s902_s2, 4096 }
  0x21   : > { %s342_s10 = sshll.u32 %s57_s28, 4 }
  0x22   : > { %s59_s13 = scalar_lea.hbm %s902_s2, %s342_s10 }
  0x23   : > { %s414_s14 = scalar_lea.hbm %s59_s13, 16  ;;  %p417_p0 = scmp.lt.s32.totalorder %s59_s13, %s902_s2 }
  0x24   : > { %p415_p13 = scmp.ne.s32.totalorder %s59_s13, %s414_s14  ;;  %p418_p1 = scmp.lt.s32.totalorder %s757_s18, %s414_s14 }
  0x26   : > { %p419_p2 = por %p418_p1, %p417_p0 }
  0x28   : > { %p420_p3 = pnand %p419_p2, %p415_p13 }
  0x2a   : > { %423 = shalt.err (!%p420_p3)  }
  0x2b   : > { %s424_s28 = scalar_lea.vmem %s742_s30, 16  ;;  %s766_s29 = scalar_lea.vmem %s742_s30, 128 }
  0x2c   : > { %p425_p4 = scmp.ne.s32.totalorder %s742_s30, %s424_s28  ;;  %p429_p5 = scmp.lt.s32.totalorder %s742_s30, %s742_s30 }
  0x2d   : > { %p430_p6 = scmp.lt.s32.totalorder %s766_s29, %s424_s28 }
  0x2f   : > { %p431_p7 = por %p430_p6, %p429_p5 }
  0x31   : > { %p432_p8 = pnand %p431_p7, %p425_p4 }
  0x33   : > { %435 = shalt.err (!%p432_p8)  }
  0x34   : > { %70 = dma.hbm_to_vmem [thread:$0]  %s59_s13, 16, %s742_s30, [#allocation3] }
  0x35   : > { %s343_s4 = sshll.u32 %s744_s5, 4  ;;  %s665_s6 = smov [#allocation2 + $0x2]  }
  0x36   : > { %s101_s7 = sshll.u32 %s665_s6, 4  ;;  %s74_s12 = scalar_lea.hbm %s902_s2, %s343_s4  ;;  %s776_s7 = int_to_ptr.vmem [resolvable:$true] %s101_s7 }
  0x37   : > { %s436_s14 = scalar_lea.hbm %s74_s12, 16  ;;  %p439_p12 = scmp.lt.s32.totalorder %s74_s12, %s902_s2 }
  0x38   : > { %p437_p10 = scmp.ne.s32.totalorder %s74_s12, %s436_s14  ;;  %p440_p13 = scmp.lt.s32.totalorder %s757_s18, %s436_s14 }
  0x3a   : > { %p441_p0 = por %p440_p13, %p439_p12 }
  0x3c   : > { %p442_p1 = pnand %p441_p0, %p437_p10 }
  0x3e   : > { %445 = shalt.err (!%p442_p1)  }
  0x3f   : > { %s446_s5 = scalar_lea.vmem %s749_s8, 16  ;;  %p451_p3 = scmp.lt.s32.totalorder %s749_s8, %s742_s30 }
  0x40   : > { %p447_p2 = scmp.ne.s32.totalorder %s749_s8, %s446_s5  ;;  %p452_p4 = scmp.lt.s32.totalorder %s766_s29, %s446_s5 }
  0x42   : > { %p453_p5 = por %p452_p4, %p451_p3 }
  0x44   : > { %p454_p6 = pnand %p453_p5, %p447_p2 }
  0x46   : > { %457 = shalt.err (!%p454_p6)  }
  0x47   : > { %87 = dma.hbm_to_vmem [thread:$0]  %s74_s12, 16, %s749_s8, [#allocation3 + $0x1] }
  0x48   : > { %s344_s13 = sshll.u32 %s747_s9, 4  ;;  %s105_s20 = sadd.s32 3, %s734_s26 }
  0x49   : > { %s91_s4 = scalar_lea.hbm %s902_s2, %s344_s13  ;;  %s106_s6 = sld [smem:[#allocation5 + %s105_s20]] }
  0x4a   : > { %s458_s10 = scalar_lea.hbm %s91_s4, 16  ;;  %p461_p8 = scmp.lt.s32.totalorder %s91_s4, %s902_s2 }
  0x4b   : > { %p459_p7 = scmp.ne.s32.totalorder %s91_s4, %s458_s10  ;;  %p462_p10 = scmp.lt.s32.totalorder %s757_s18, %s458_s10 }
  0x4d   : > { %p463_p12 = por %p462_p10, %p461_p8 }
  0x4f   : > { %p464_p13 = pnand %p463_p12, %p459_p7 }
  0x51   : > { %467 = shalt.err (!%p464_p13)  }
  0x52   : > { %s468_s8 = scalar_lea.vmem %s776_s7, 16  ;;  %p473_p1 = scmp.lt.s32.totalorder %s776_s7, %s742_s30 }
  0x53   : > { %p469_p0 = scmp.ne.s32.totalorder %s776_s7, %s468_s8  ;;  %p474_p2 = scmp.lt.s32.totalorder %s766_s29, %s468_s8 }
  0x55   : > { %p475_p3 = por %p474_p2, %p473_p1 }
  0x57   : > { %p476_p4 = pnand %p475_p3, %p469_p0 }
  0x59   : > { %479 = shalt.err (!%p476_p4)  }
  0x5a   : > { %104 = dma.hbm_to_vmem [thread:$0]  %s91_s4, 16, %s776_s7, [#allocation3 + $0x2] }
  0x5b   : > { %s122_s9 = sadd.s32 4, %s734_s26  ;;  %s666_s12 = smov [#allocation2 + $0x3]  }
  0x5c   : > { %s118_s15 = sshll.u32 %s666_s12, 4  ;;  %s123_s16 = sld [smem:[#allocation5 + %s122_s9]]  ;;  %s119_s15 = int_to_ptr.vmem [resolvable:$true] %s118_s15 }
  0x5d   : > { %s667_s5 = smov [#allocation2 + $0x4]   ;;  %s139_s20 = sadd.s32 5, %s734_s26 }
  0x5e   : > { %s135_s13 = sshll.u32 %s667_s5, 4  ;;  %s345_s21 = sshll.u32 %s106_s6, 4  ;;  %s805_s13 = int_to_ptr.vmem [resolvable:$true] %s135_s13 }
  0x5f   : > { %s108_s11 = scalar_lea.hbm %s902_s2, %s345_s21  ;;  %s810_s14 = sld [smem:[#allocation5 + %s139_s20]] }
  0x60   : > { %s480_s8 = scalar_lea.hbm %s108_s11, 16  ;;  %p483_p6 = scmp.lt.s32.totalorder %s108_s11, %s902_s2 }
  0x61   : > { %p481_p5 = scmp.ne.s32.totalorder %s108_s11, %s480_s8  ;;  %p484_p7 = scmp.lt.s32.totalorder %s757_s18, %s480_s8 }
  0x63   : > { %p485_p8 = por %p484_p7, %p483_p6 }
  0x65   : > { %p486_p10 = pnand %p485_p8, %p481_p5 }
  0x67   : > { %489 = shalt.err (!%p486_p10)  }
  0x68   : > { %s490_s9 = scalar_lea.vmem %s119_s15, 16  ;;  %p495_p13 = scmp.lt.s32.totalorder %s119_s15, %s742_s30 }
  0x69   : > { %p491_p12 = scmp.ne.s32.totalorder %s119_s15, %s490_s9  ;;  %p496_p0 = scmp.lt.s32.totalorder %s766_s29, %s490_s9 }
  0x6b   : > { %p497_p1 = por %p496_p0, %p495_p13 }
  0x6d   : > { %p498_p2 = pnand %p497_p1, %p491_p12 }
  0x6f   : > { %501 = shalt.err (!%p498_p2)  }
  0x70   : > { %121 = dma.hbm_to_vmem [thread:$0]  %s108_s11, 16, %s119_s15, [#allocation3 + $0x3] }
  0x71   : > { %s346_s6 = sshll.u32 %s123_s16, 4  ;;  %s668_s21 = smov [#allocation2 + $0x5]  }
  0x72   : > { %s125_s20 = scalar_lea.hbm %s902_s2, %s346_s6  ;;  %s152_s28 = sshll.u32 %s668_s21, 4  ;;  %s153_s28 = int_to_ptr.vmem [resolvable:$true] %s152_s28 }
  0x73   : > { %s502_s10 = scalar_lea.hbm %s125_s20, 16  ;;  %p505_p4 = scmp.lt.s32.totalorder %s125_s20, %s902_s2 }
  0x74   : > { %p503_p3 = scmp.ne.s32.totalorder %s125_s20, %s502_s10  ;;  %p506_p5 = scmp.lt.s32.totalorder %s757_s18, %s502_s10 }
  0x76   : > { %p507_p6 = por %p506_p5, %p505_p4 }
  0x78   : > { %p508_p7 = pnand %p507_p6, %p503_p3 }
  0x7a   : > { %511 = shalt.err (!%p508_p7)  }
  0x7b   : > { %s512_s15 = scalar_lea.vmem %s805_s13, 16  ;;  %p517_p10 = scmp.lt.s32.totalorder %s805_s13, %s742_s30 }
  0x7c   : > { %p513_p8 = scmp.ne.s32.totalorder %s805_s13, %s512_s15  ;;  %p518_p12 = scmp.lt.s32.totalorder %s766_s29, %s512_s15 }
  0x7e   : > { %p519_p13 = por %p518_p12, %p517_p10 }
  0x80   : > { %p520_p0 = pnand %p519_p13, %p513_p8 }
  0x82   : > { %523 = shalt.err (!%p520_p0)  }
  0x83   : > { %138 = dma.hbm_to_vmem [thread:$0]  %s125_s20, 16, %s805_s13, [#allocation3 + $0x4] }
  0x84   : > { %s156_s16 = sadd.s32 6, %s734_s26  ;;  %s347_s11 = sshll.u32 %s810_s14, 4 }
  0x85   : > { %s157_s4 = sld [smem:[#allocation5 + %s156_s16]]  ;;  %s142_s12 = scalar_lea.hbm %s902_s2, %s347_s11 }
  0x86   : > { %s524_s5 = scalar_lea.hbm %s142_s12, 16  ;;  %p527_p2 = scmp.lt.s32.totalorder %s142_s12, %s902_s2 }
  0x87   : > { %p525_p1 = scmp.ne.s32.totalorder %s142_s12, %s524_s5  ;;  %p528_p3 = scmp.lt.s32.totalorder %s757_s18, %s524_s5 }
  0x89   : > { %p529_p4 = por %p528_p3, %p527_p2 }
  0x8b   : > { %p530_p5 = pnand %p529_p4, %p525_p1 }
  0x8d   : > { %533 = shalt.err (!%p530_p5)  }
  0x8e   : > { %s534_s8 = scalar_lea.vmem %s153_s28, 16  ;;  %p539_p7 = scmp.lt.s32.totalorder %s153_s28, %s742_s30 }
  0x8f   : > { %p535_p6 = scmp.ne.s32.totalorder %s153_s28, %s534_s8  ;;  %p540_p8 = scmp.lt.s32.totalorder %s766_s29, %s534_s8 }
  0x91   : > { %p541_p10 = por %p540_p8, %p539_p7 }
  0x93   : > { %p542_p12 = pnand %p541_p10, %p535_p6 }
  0x95   : > { %545 = shalt.err (!%p542_p12)  }
  0x96   : > { %155 = dma.hbm_to_vmem [thread:$0]  %s142_s12, 16, %s153_s28, [#allocation3 + $0x5] }
  0x97   : > { %s669_s13 = smov [#allocation2 + $0x6]   ;;  %s173_s20 = sadd.s32 7, %s734_s26 }
  0x98   : > { %s169_s14 = sshll.u32 %s669_s13, 4  ;;  %s174_s7 = sld [smem:[#allocation5 + %s173_s20]]  ;;  %s170_s14 = int_to_ptr.vmem [resolvable:$true] %s169_s14 }
  0x99   : > { %s348_s15 = sshll.u32 %s157_s4, 4  ;;  %s670_s16 = smov [#allocation2 + $0x7]  }
  0x9a   : > { %s186_s11 = sshll.u32 %s670_s16, 4  ;;  %s159_s5 = scalar_lea.hbm %s902_s2, %s348_s15  ;;  %s187_s11 = int_to_ptr.vmem [resolvable:$true] %s186_s11 }
  0x9b   : > { %s546_s21 = scalar_lea.hbm %s159_s5, 16  ;;  %p549_p0 = scmp.lt.s32.totalorder %s159_s5, %s902_s2 }
  0x9c   : > { %p547_p13 = scmp.ne.s32.totalorder %s159_s5, %s546_s21  ;;  %p550_p1 = scmp.lt.s32.totalorder %s757_s18, %s546_s21 }
  0x9e   : > { %p551_p2 = por %p550_p1, %p549_p0 }
  0xa0   : > { %p552_p3 = pnand %p551_p2, %p547_p13 }
  0xa2   : > { %555 = shalt.err (!%p552_p3)  }
  0xa3   : > { %s556_s26 = scalar_lea.vmem %s170_s14, 16  ;;  %p561_p5 = scmp.lt.s32.totalorder %s170_s14, %s742_s30 }
  0xa4   : > { %p557_p4 = scmp.ne.s32.totalorder %s170_s14, %s556_s26  ;;  %p562_p6 = scmp.lt.s32.totalorder %s766_s29, %s556_s26 }
  0xa6   : > { %p563_p7 = por %p562_p6, %p561_p5 }
  0xa8   : > { %p564_p8 = pnand %p563_p7, %p557_p4 }
  0xaa   : > { %567 = shalt.err (!%p564_p8)  }
  0xab   : > { %172 = dma.hbm_to_vmem [thread:$0]  %s159_s5, 16, %s170_s14, [#allocation3 + $0x6] }
  0xac   : > { %s349_s28 = sshll.u32 %s174_s7, 4 }
  0xad   : > { %s176_s13 = scalar_lea.hbm %s902_s2, %s349_s28 }
  0xae   : > { %s568_s20 = scalar_lea.hbm %s176_s13, 16  ;;  %p571_p12 = scmp.lt.s32.totalorder %s176_s13, %s902_s2 }
  0xaf   : > { %p569_p10 = scmp.ne.s32.totalorder %s176_s13, %s568_s20  ;;  %p572_p13 = scmp.lt.s32.totalorder %s757_s18, %s568_s20 }
  0xb1   : > { %p573_p0 = por %p572_p13, %p571_p12 }
  0xb3   : > { %p574_p1 = pnand %p573_p0, %p569_p10 }
  0xb5   : > { %577 = shalt.err (!%p574_p1)  }
  0xb6   : > { %s578_s9 = scalar_lea.vmem %s187_s11, 16  ;;  %p583_p3 = scmp.lt.s32.totalorder %s187_s11, %s742_s30 }
  0xb7   : > { %p579_p2 = scmp.ne.s32.totalorder %s187_s11, %s578_s9  ;;  %p584_p4 = scmp.lt.s32.totalorder %s766_s29, %s578_s9 }
  0xb9   : > { %p585_p5 = por %p584_p4, %p583_p3 }
  0xbb   : > { %p586_p6 = pnand %p585_p5, %p579_p2 }
  0xbd   : > { %589 = shalt.err (!%p586_p6)  }
  0xbe   : > { %189 = dma.hbm_to_vmem [thread:$0]  %s176_s13, 16, %s187_s11, [#allocation3 + $0x7] }
  0xbf   : > { %s55_s14 = scalar_lea.vmem [#allocation7], %s738_s27 }
  0xc0   : > { %630 = dma.done.wait [#allocation3], 16 }
  0xc1   : > { %631 = vsyncadd [#allocation3], 4294967280 }
  0xc2   : > { %632 = dma.done.wait [#allocation3 + $0x1], 16 }
  0xc3   : > { %633 = vsyncadd [#allocation3 + $0x1], 4294967280 }
  0xc4   : > { %634 = dma.done.wait [#allocation3 + $0x2], 16 }
  0xc5   : > { %635 = vsyncadd [#allocation3 + $0x2], 4294967280 }
  0xc6   : > { %636 = dma.done.wait [#allocation3 + $0x3], 16 }
  0xc7   : > { %637 = vsyncadd [#allocation3 + $0x3], 4294967280 }
  0xc8   : > { %638 = dma.done.wait [#allocation3 + $0x4], 16 }
  0xc9   : > { %639 = vsyncadd [#allocation3 + $0x4], 4294967280 }
  0xca   : > { %640 = dma.done.wait [#allocation3 + $0x5], 16 }
  0xcb   : > { %641 = vsyncadd [#allocation3 + $0x5], 4294967280 }
  0xcc   : > { %642 = dma.done.wait [#allocation3 + $0x6], 16 }
  0xcd   : > { %643 = vsyncadd [#allocation3 + $0x6], 4294967280 }
  0xce   : > { %644 = dma.done.wait [#allocation3 + $0x7], 16 }
  0xcf   : > { %645 = vsyncadd [#allocation3 + $0x7], 4294967280  ;;  %s351_s27 = sshll.u32 %s660_s0, 7  ;;  %s223_s30 = sshll.u32 %s55_s14, 4  ;;  %v207_v0 = vld [vmem:[#allocation2] sm:$0xff]  ;;  %s224_s30 = int_to_ptr.vmem [resolvable:$true] %s223_s30 }
  0xd0   : > { %s866_s7 = scalar_lea.hbm %s903_s3, %s351_s27  ;;  %208 = vst [vmem:[%s55_s14] sm:$0xff] %v207_v0  ;;  %s210_s11 = scalar_lea.sflag [#allocation8], %s53_s25 }
  0xd1   : > { %s590_s6 = scalar_lea.vmem %s224_s30, 128  ;;  %s671_s5 = smov [#allocation7]  }
  0xd2   : > { %p591_p7 = scmp.ne.s32.totalorder %s224_s30, %s590_s6  ;;  %s594_s21 = sshll.u32 %s671_s5, 4  ;;  %s595_s21 = int_to_ptr.vmem [resolvable:$false] %s594_s21 }
  0xd3   : > { %s596_s10 = scalar_lea.vmem %s595_s21, 256  ;;  %p597_p12 = scmp.lt.s32.totalorder %s224_s30, %s595_s21 }
  0xd4   : > { %p592_p8 = pnand %p591_p7, %p723_p9  ;;  %p598_p13 = scmp.lt.s32.totalorder %s596_s10, %s590_s6 }
  0xd6   : > { %p593_p10 = pneg %p592_p8  ;;  %p599_p0 = por %p598_p13, %p597_p12 }
  0xd8   : > { %p600_p1 = pnand %p599_p0, %p593_p10 }
  0xda   : > { %603 = shalt.err (!%p600_p1)
}
  0xdb   : > { %s604_s8 = scalar_lea.hbm %s866_s7, 128  ;;  %s608_s28 = scalar_lea.hbm %s903_s3, 256 }
  0xdc   : > { %p605_p2 = scmp.ne.s32.totalorder %s866_s7, %s604_s8  ;;  %p609_p5 = scmp.lt.s32.totalorder %s866_s7, %s903_s3 }
  0xdd   : > { %p610_p6 = scmp.lt.s32.totalorder %s608_s28, %s604_s8 }
  0xde   : > { %p606_p3 = pnand %p605_p2, %p723_p9 }
  0xdf   : > { %p611_p7 = por %p610_p6, %p609_p5 }
  0xe0   : > { %p607_p4 = pneg %p606_p3 }
  0xe2   : > { %p612_p8 = pnand %p611_p7, %p607_p4 }
  0xe4   : > { %615 = shalt.err (!%p612_p8)
}
  0xe5   : > { %362 = dma.vmem_to_hbm [thread:$0]  (%p723_p9), %s224_s30, 128, %s866_s7, %s210_s11  }
  0xe6 PF: > { %p368_p10 = scmp.ge.s32.totalorder %s660_s0, 1  ;;  %s235_s13 = sand.u32 1, %s652_s1  }
  0xe7   : > { %s236_s20 = scalar_lea.sflag [#allocation8], %s235_s13 }
  0xe8   : > { %p365_p12 = pnand %p368_p10, %p727_p11 }
  0xea   : > { %p366_p13 = pneg %p365_p12 }
  0xec   : > { %647 = dma.done.wait (%p366_p13), %s236_s20, 128  }
  0xed   : > { %649 = vsyncadd (%p366_p13), %s236_s20, 4294967168  ;;  %p20_p0 = scmp.ge.s32.totalorder %s712_s19, 3   ;;  %s906_s1 = smov %s656_s17 }
  0xee   : > { %s907_s17 = smov %s721_s22  ;;  %s908_s0 = smov %s712_s19 }
  0xef   :  { %22 = sbr.rel (!%p20_p0) target bundleno = 18 (0x12), region = 105 }
  0xf4   :  { %241 = vsyncpa [#allocation8], 1 }
  0xf5   :  { %243 = vsyncpa [#allocation8 + $0x1], 1 }
  0xf6   :  { %244 = vsyncmov [#allocation3] }
  0xf9   :  { %s245_s0 = vpop.sfrf %244 }
  0xfa   :  { %p354_p9 = scmp.ne.s32.totalorder %s245_s0, 0 }
  0xfc   :  { %249 = shalt.err (%p354_p9)  }
  0xfd   :  { %251 = vsyncmov [#allocation3 + $0x1] }
 0x100   :  { %s252_s23 = vpop.sfrf %251 }
 0x101   :  { %p355_p11 = scmp.ne.s32.totalorder %s252_s23, 0 }
 0x103   :  { %256 = shalt.err (%p355_p11)  }
 0x104   :  { %258 = vsyncmov [#allocation3 + $0x2] }
 0x107   :  { %s259_s24 = vpop.sfrf %258 }
 0x108   :  { %p356_p1 = scmp.ne.s32.totalorder %s259_s24, 0 }
 0x10a   :  { %263 = shalt.err (%p356_p1)  }
 0x10b   :  { %265 = vsyncmov [#allocation3 + $0x3] }
 0x10e   :  { %s266_s15 = vpop.sfrf %265 }
 0x10f   :  { %p357_p2 = scmp.ne.s32.totalorder %s266_s15, 0 }
 0x111   :  { %270 = shalt.err (%p357_p2)  }
 0x112   :  { %272 = vsyncmov [#allocation3 + $0x4] }
 0x115   :  { %s273_s19 = vpop.sfrf %272 }
 0x116   :  { %p358_p3 = scmp.ne.s32.totalorder %s273_s19, 0 }
 0x118   :  { %277 = shalt.err (%p358_p3)  }
 0x119   :  { %279 = vsyncmov [#allocation3 + $0x5] }
 0x11c   :  { %s280_s2 = vpop.sfrf %279 }
 0x11d   :  { %p359_p4 = scmp.ne.s32.totalorder %s280_s2, 0 }
 0x11f   :  { %284 = shalt.err (%p359_p4)  }
 0x120   :  { %286 = vsyncmov [#allocation3 + $0x6] }
 0x123   :  { %s287_s3 = vpop.sfrf %286 }
 0x124   :  { %p360_p5 = scmp.ne.s32.totalorder %s287_s3, 0 }
 0x126   :  { %291 = shalt.err (%p360_p5)  }
 0x127   :  { %293 = vsyncmov [#allocation3 + $0x7] }
 0x12a   :  { %s294_s1 = vpop.sfrf %293 }
 0x12b   :  { %p361_p6 = scmp.ne.s32.totalorder %s294_s1, 0 }
 0x12d   :  { %298 = shalt.err (%p361_p6)  }

</bundles_post_ra>
